<compile_context>
chip_gen: v6e
topology: v6e:2x2x1
jax: 0.10.0
libtpu: 0.0.40
codegen_flags: <defaults>
</compile_context>

<pallas_src>
import functools

import jax
import jax.numpy as jnp
from jax.experimental import pallas as pl
from jax.experimental.pallas import tpu as pltpu


def _choose_tile(n, preferred):
    """Largest power-of-two-ish tile <= preferred dividing n; falls back to full
    extent for small / non-divisible (demo) shapes."""
    if n <= preferred:
        return n
    t = preferred
    while t >= 128:
        if n % t == 0:
            return t
        t //= 2
    return n


# ---------------------------------------------------------------------------
# Kernel 1: QKV projection (1x1 conv == channel matmul), writes q/k/v directly
#           in the lane-packed (B, N, heads*dim_head) layout (no transposes).
# ---------------------------------------------------------------------------
def _qkv_kernel(x_ref, w_ref, q_ref, k_ref, v_ref):
    # x_ref: (C, tn) f32 (native layout), w_ref: (C, 3*inner) bf16.
    x = x_ref[...].astype(jnp.bfloat16)
    acc = jax.lax.dot_general(
        x, w_ref[...],
        dimension_numbers=(((0,), (0,)), ((), ())),     # contract over C (x^T @ w)
        preferred_element_type=jnp.float32)             # (tn, 3*inner) f32
    inner = q_ref.shape[-1]
    q_ref[...] = acc[:, :inner].astype(q_ref.dtype)
    k_ref[...] = acc[:, inner:2 * inner].astype(k_ref.dtype)
    v_ref[...] = acc[:, 2 * inner:].astype(v_ref.dtype)


def qkv_project(x3, w_bf16, inner, *, tn_pref=512):
    """x3: (B, C, N) f32, w: (C, 3*inner) bf16 -> 3 x (B, N, inner) bf16."""
    B, C, N = x3.shape
    O = w_bf16.shape[1]
    tn = _choose_tile(N, tn_pref)
    grid = (B, N // tn)
    out_spec = pl.BlockSpec((None, tn, inner), lambda b, i: (b, i, 0))
    return pl.pallas_call(
        _qkv_kernel,
        out_shape=tuple(jax.ShapeDtypeStruct((B, N, inner), jnp.bfloat16)
                        for _ in range(3)),
        grid=grid,
        in_specs=[
            pl.BlockSpec((None, C, tn), lambda b, i: (b, 0, i)),   # x tile (C, tn)
            pl.BlockSpec((C, O), lambda b, i: (0, 0)),             # weight resident
        ],
        out_specs=(out_spec, out_spec, out_spec),
        compiler_params=pltpu.CompilerParams(
            dimension_semantics=("parallel", "parallel"),
            vmem_limit_bytes=32 * 1024 * 1024),
        cost_estimate=pl.CostEstimate(
            flops=2 * B * N * C * O,
            transcendentals=0,
            bytes_accessed=4 * B * C * N + 2 * C * O + 2 * B * N * O),
    )(x3, w_bf16)


# ---------------------------------------------------------------------------
# Kernel 2: flash attention (online softmax over KV tiles), heads lane-packed.
# ---------------------------------------------------------------------------
def _flash_attn_kernel(q_ref, k_ref, v_ref, embt_ref, fac_ref, o_ref,
                       m_s, l_s, acc_s, *, scale, heads, dim_head):
    ki = pl.program_id(2)
    nk = pl.num_programs(2)

    @pl.when(ki == 0)
    def _():
        m_s[...] = jnp.full_like(m_s, -jnp.inf)
        l_s[...] = jnp.zeros_like(l_s)
        acc_s[...] = jnp.zeros_like(acc_s)

    q = q_ref[...]                                            # (tq, h*D) bf16
    # Fold abs-pos emb and the q-scale into K (exact up to one bf16 rounding):
    #   scale*q.k^T + scale*q.emb^T == q.((k+emb)*scale)^T
    ke = ((k_ref[...].astype(jnp.float32) + embt_ref[...].astype(jnp.float32))
          * scale).astype(jnp.bfloat16)                       # (tk, h*D)
    v = v_ref[...]                                            # (tk, h*D) bf16

    for h in range(heads):                                    # static unroll
        hs = slice(h * dim_head, (h + 1) * dim_head)
        # Logits for this head: one MXU matmul, f32 accumulation.
        s = jax.lax.dot_general(
            q[:, hs], ke[:, hs],
            dimension_numbers=(((1,), (1,)), ((), ())),
            preferred_element_type=jnp.float32)               # (tq, tk) f32

        m_prev = m_s[:, h:h + 1]                              # (tq, 1)
        m_new = jnp.maximum(m_prev, jnp.max(s, axis=-1, keepdims=True))
        alpha = jnp.exp(m_prev - m_new)
        p = jnp.exp(s - m_new)                                # (tq, tk) f32
        l_s[:, h:h + 1] = alpha * l_s[:, h:h + 1] + jnp.sum(p, axis=-1, keepdims=True)
        pv = jax.lax.dot_general(
            p.astype(v.dtype), v[:, hs],
            dimension_numbers=(((1,), (0,)), ((), ())),
            preferred_element_type=jnp.float32)               # (tq, D) f32
        acc_s[:, hs] = alpha * acc_s[:, hs] + pv
        m_s[:, h:h + 1] = m_new

    @pl.when(ki == nk - 1)
    def _():
        # Deferred softmax normalization (per-head 1/l) applied in VMEM scratch,
        # then ONE unmasked, lane-dense store of the (tq, heads*D) slab, scaled
        # by the per-head 0.5*(1+spe) lane vector.
        for h in range(heads):
            hs = slice(h * dim_head, (h + 1) * dim_head)
            linv = pl.reciprocal(l_s[:, h:h + 1], approx=True)
            acc_s[:, hs] = acc_s[:, hs] * linv
        o_ref[...] = (acc_s[...] * fac_ref[...]).astype(o_ref.dtype)


def attention_pallas(q, k, v, embt, fac, scale, *, heads, dim_head,
                     tq_pref=256, tk_pref=256):
    """q,k,v: (B, N, heads*D) bf16; embt: (N, heads*D) bf16; fac: (B, 1, heads*D) f32
       -> (B, N, heads*D) bf16 (heads packed in the lane dimension)."""
    B, N, inner = q.shape
    tq = _choose_tile(N, tq_pref)
    tk = _choose_tile(N, tk_pref)
    grid = (B, N // tq, N // tk)
    kern = functools.partial(_flash_attn_kernel, scale=scale,
                             heads=heads, dim_head=dim_head)
    q_spec = pl.BlockSpec((None, tq, inner), lambda b, qi, ki: (b, qi, 0))
    kv_spec = pl.BlockSpec((None, tk, inner), lambda b, qi, ki: (b, ki, 0))
    return pl.pallas_call(
        kern,
        out_shape=jax.ShapeDtypeStruct((B, N, inner), jnp.bfloat16),
        grid=grid,
        in_specs=[
            q_spec,                                                   # q
            kv_spec,                                                  # k
            kv_spec,                                                  # v
            pl.BlockSpec((tk, inner), lambda b, qi, ki: (ki, 0)),     # pos-emb (head-tiled)
            pl.BlockSpec((None, 1, inner), lambda b, qi, ki: (b, 0, 0)),  # 0.5*(1+spe) lanes
        ],
        out_specs=pl.BlockSpec((None, tq, inner), lambda b, qi, ki: (b, qi, 0)),
        scratch_shapes=[
            pltpu.VMEM((tq, heads), jnp.float32),        # running max
            pltpu.VMEM((tq, heads), jnp.float32),        # running sum
            pltpu.VMEM((tq, inner), jnp.float32),        # unnormalized output acc
        ],
        compiler_params=pltpu.CompilerParams(
            dimension_semantics=("parallel", "parallel", "arbitrary"),
            vmem_limit_bytes=32 * 1024 * 1024),
        cost_estimate=pl.CostEstimate(
            flops=4 * B * heads * N * N * dim_head,
            transcendentals=B * heads * N * N,
            bytes_accessed=3 * B * N * inner * 2 + N * inner * 2 + B * N * inner * 2),
    )(q, k, v, embt, fac)


# ---------------------------------------------------------------------------
# Full module forward (glue in plain JAX, hot paths in Pallas)
# ---------------------------------------------------------------------------
def selfatten_forward(x5, params, *, heads, dim_head):
    """x5: (B, C, H, W, 1) float32 -> (B, heads*dim_head, H, W, 1) float32."""
    x = x5[..., 0]                                   # squeeze(dim=4): (B, C, H, W)
    B, C, H, W = x.shape
    N = H * W
    inner = heads * dim_head
    scale = dim_head ** (-0.5)

    # -- QKV projection: x stays in native (B, C, N) layout (free reshape),
    #    kernel contracts over C and emits lane-packed q/k/v directly.
    x3 = x.reshape(B, C, N)
    w = params["w_qkv"].astype(jnp.bfloat16)                     # (C, 3*inner)
    q, k, v = qkv_project(x3, w, inner)                          # 3 x (B, N, inner) bf16

    # -- absolute position embedding, tiled over heads so it adds directly to
    #    the lane-packed K inside the attention kernel (scale folded in-kernel).
    emb = (params["pos_height"][:, None, :] +
           params["pos_width"][None, :, :]).reshape(N, dim_head)
    embt = jnp.tile(emb, (1, heads)).astype(jnp.bfloat16)        # (N, inner)

    # -- spe branch: per-(b, head) scalar = mean over (C/heads, spatial).
    #    Exact fusion: 0.5*(attn@v + (attn*spe)@v) == 0.5*(1+spe)*(attn@v),
    #    broadcast to a per-head lane vector for one fused output multiply.
    spe = x.reshape(B, heads, C // heads, N).mean(axis=(2, 3))   # (B, heads) f32
    fac = jnp.repeat(0.5 * (1.0 + spe), dim_head, axis=1).reshape(B, 1, inner)

    out = attention_pallas(q, k, v, embt, fac, scale,
                           heads=heads, dim_head=dim_head)       # (B, N, inner) bf16

    # -- back to NCHW(+1); channel index = h*dim_head + d (matches torch layout).
    out = out.reshape(B, H, W, inner).transpose(0, 3, 1, 2)
    return out[..., None].astype(jnp.float32)


# ---------------------------------------------------------------------------
# Pure-JAX f32 reference for checking
# ---------------------------------------------------------------------------
def selfatten_reference(x5, params, *, heads, dim_head):
    x = x5[..., 0]
    B, C, H, W = x.shape
    N = H * W
    scale = dim_head ** (-0.5)
    x2d = x.reshape(B, C, N).transpose(0, 2, 1)
    qkv = jnp.einsum('bnc,co->bno', x2d, params["w_qkv"])
    q, k, v = jnp.split(qkv, 3, axis=-1)
    reshead = lambda t: t.reshape(B, N, heads, dim_head).transpose(0, 2, 1, 3)
    q, k, v = map(reshead, (q, k, v))
    q = q * scale
    emb = (params["pos_height"][:, None, :] +
           params["pos_width"][None, :, :]).reshape(N, dim_head)
    sim = jnp.einsum('bhid,bhjd->bhij', q, k) + jnp.einsum('bhid,jd->bhij', q, emb)
    attn = jax.nn.softmax(sim, axis=-1)
    out = jnp.einsum('bhij,bhjd->bhid', attn, v)
    spe = x.reshape(B, heads, C // heads, N).mean(axis=(2, 3))   # (B, h)
    out2 = jnp.einsum('bhij,bhjd->bhid', attn * spe[:, :, None, None], v)
    out3 = (out + out2) / 2
    out3 = out3.reshape(B, heads, H, W, dim_head).transpose(0, 1, 4, 2, 3)
    return out3.reshape(B, heads * dim_head, H, W)[..., None]


if __name__ == "__main__":
    # Small, consistent config: C must be divisible by heads (spe rearrange).
    B, DIM, FMAP = 2, 8, 4
    HEADS, DIM_HEAD = 4, 8
    INNER = HEADS * DIM_HEAD
    scale = DIM_HEAD ** (-0.5)

    key = jax.random.PRNGKey(0)
    kx, kw, kh, kw2 = jax.random.split(key, 4)

    params = {
        # torch conv weight is (3*inner, dim, 1, 1); we store the matmul form (dim, 3*inner)
        "w_qkv": jax.random.normal(kw, (DIM, 3 * INNER), jnp.float32) * 0.1,
        "pos_height": jax.random.normal(kh, (FMAP, DIM_HEAD), jnp.float32) * scale,
        "pos_width": jax.random.normal(kw2, (FMAP, DIM_HEAD), jnp.float32) * scale,
    }

    x = jax.random.normal(kx, (B, DIM, FMAP, FMAP, 1), jnp.float32)

    out = jax.block_until_ready(
        selfatten_forward(x, params, heads=HEADS, dim_head=DIM_HEAD))
    ref = jax.block_until_ready(
        selfatten_reference(x, params, heads=HEADS, dim_head=DIM_HEAD))

    assert out.shape == (B, INNER, FMAP, FMAP, 1), out.shape
    # bf16 MXU operands + bf16 output + approx reciprocal vs f32 reference.
    err = jnp.max(jnp.abs(out - ref))
    assert jnp.allclose(out, ref, rtol=2e-2, atol=2e-2), f"max abs err {err}"

    print("KERNEL_OK")
</pallas_src>

<mosaic_0001>
module attributes {stable_mosaic.version = 11 : i64} {
  func.func @_qkv_kernel(%arg0: i32, %arg1: i32, %arg2: memref<1x8x16xf32, #tpu.memory_space<vmem>>, %arg3: memref<8x96xbf16, #tpu.memory_space<vmem>>, %arg4: memref<1x16x32xbf16, #tpu.memory_space<vmem>>, %arg5: memref<1x16x32xbf16, #tpu.memory_space<vmem>>, %arg6: memref<1x16x32xbf16, #tpu.memory_space<vmem>>) attributes {dimension_semantics = [#tpu.dimension_semantics<parallel>, #tpu.dimension_semantics<parallel>], iteration_bounds = array<i64: 2, 1>, scalar_prefetch = 0 : i64, scratch_operands = 0 : i64, tpu.core_type = #tpu.core_type<tc>, window_params = [{transform_indices = @transform_0, window_bounds = array<i64: 1, 8, 16>}, {pipeline_mode = #tpu.pipeline_mode<synchronous>, transform_indices = @transform_1, window_bounds = array<i64: 8, 96>}, {transform_indices = @transform_2, window_bounds = array<i64: 1, 16, 32>}, {transform_indices = @transform_3, window_bounds = array<i64: 1, 16, 32>}, {transform_indices = @transform_4, window_bounds = array<i64: 1, 16, 32>}]} {
    %c0 = arith.constant 0 : index
    %c0_0 = arith.constant 0 : index
    %c0_1 = arith.constant 0 : index
    %0 = vector.load %arg2[%c0, %c0_0, %c0_1] : memref<1x8x16xf32, #tpu.memory_space<vmem>>, vector<1x8x16xf32>
    %1 = vector.shape_cast %0 : vector<1x8x16xf32> to vector<8x16xf32>
    %2 = arith.truncf %1 : vector<8x16xf32> to vector<8x16xbf16>
    %c0_2 = arith.constant 0 : index
    %c0_3 = arith.constant 0 : index
    %3 = vector.load %arg3[%c0_2, %c0_3] : memref<8x96xbf16, #tpu.memory_space<vmem>>, vector<8x96xbf16>
    %cst = arith.constant dense<0.000000e+00> : vector<16x96xf32>
    %4 = tpu.matmul %2, %3, %cst {dimension_numbers = #tpu.dot_dimension_numbers<[0], [0], [1], [1], [0, 1, 1, 1], [], []>} : vector<8x16xbf16>, vector<8x96xbf16>, vector<16x96xf32> -> vector<16x96xf32>
    %5 = vector.extract_strided_slice %4 {offsets = [0, 0], sizes = [16, 32], strides = [1, 1]} : vector<16x96xf32> to vector<16x32xf32>
    %6 = arith.truncf %5 : vector<16x32xf32> to vector<16x32xbf16>
    %c0_4 = arith.constant 0 : index
    %c0_5 = arith.constant 0 : index
    %c0_6 = arith.constant 0 : index
    %7 = vector.load %arg4[%c0_4, %c0_5, %c0_6] : memref<1x16x32xbf16, #tpu.memory_space<vmem>>, vector<1x16x32xbf16>
    %8 = vector.shape_cast %7 : vector<1x16x32xbf16> to vector<16x32xbf16>
    %9 = vector.shape_cast %6 : vector<16x32xbf16> to vector<1x16x32xbf16>
    tpu.vector_store %arg4[%c0_4, %c0_5, %c0_6], %9 {strides = array<i32>} : memref<1x16x32xbf16, #tpu.memory_space<vmem>>, vector<1x16x32xbf16>,
    %10 = vector.extract_strided_slice %4 {offsets = [0, 32], sizes = [16, 32], strides = [1, 1]} : vector<16x96xf32> to vector<16x32xf32>
    %11 = arith.truncf %10 : vector<16x32xf32> to vector<16x32xbf16>
    %c0_7 = arith.constant 0 : index
    %c0_8 = arith.constant 0 : index
    %c0_9 = arith.constant 0 : index
    %12 = vector.load %arg5[%c0_7, %c0_8, %c0_9] : memref<1x16x32xbf16, #tpu.memory_space<vmem>>, vector<1x16x32xbf16>
    %13 = vector.shape_cast %12 : vector<1x16x32xbf16> to vector<16x32xbf16>
    %14 = vector.shape_cast %11 : vector<16x32xbf16> to vector<1x16x32xbf16>
    tpu.vector_store %arg5[%c0_7, %c0_8, %c0_9], %14 {strides = array<i32>} : memref<1x16x32xbf16, #tpu.memory_space<vmem>>, vector<1x16x32xbf16>,
    %15 = vector.extract_strided_slice %4 {offsets = [0, 64], sizes = [16, 32], strides = [1, 1]} : vector<16x96xf32> to vector<16x32xf32>
    %16 = arith.truncf %15 : vector<16x32xf32> to vector<16x32xbf16>
    %c0_10 = arith.constant 0 : index
    %c0_11 = arith.constant 0 : index
    %c0_12 = arith.constant 0 : index
    %17 = vector.load %arg6[%c0_10, %c0_11, %c0_12] : memref<1x16x32xbf16, #tpu.memory_space<vmem>>, vector<1x16x32xbf16>
    %18 = vector.shape_cast %17 : vector<1x16x32xbf16> to vector<16x32xbf16>
    %19 = vector.shape_cast %16 : vector<16x32xbf16> to vector<1x16x32xbf16>
    tpu.vector_store %arg6[%c0_10, %c0_11, %c0_12], %19 {strides = array<i32>} : memref<1x16x32xbf16, #tpu.memory_space<vmem>>, vector<1x16x32xbf16>,
    return
  }
  func.func @transform_0(%arg0: i32, %arg1: i32) -> (i32, i32, i32) {
    %c0_i32 = arith.constant 0 : i32
    %c0_i32_0 = arith.constant 0 : i32
    return %arg0, %c0_i32, %arg1 : i32, i32, i32
  }
  func.func @transform_1(%arg0: i32, %arg1: i32) -> (i32, i32) {
    %c0_i32 = arith.constant 0 : i32
    %c0_i32_0 = arith.constant 0 : i32
    %c0_i32_1 = arith.constant 0 : i32
    return %c0_i32, %c0_i32_0 : i32, i32
  }
  func.func @transform_2(%arg0: i32, %arg1: i32) -> (i32, i32, i32) {
    %c0_i32 = arith.constant 0 : i32
    %c0_i32_0 = arith.constant 0 : i32
    return %arg0, %arg1, %c0_i32 : i32, i32, i32
  }
  func.func @transform_3(%arg0: i32, %arg1: i32) -> (i32, i32, i32) {
    %c0_i32 = arith.constant 0 : i32
    %c0_i32_0 = arith.constant 0 : i32
    return %arg0, %arg1, %c0_i32 : i32, i32, i32
  }
  func.func @transform_4(%arg0: i32, %arg1: i32) -> (i32, i32, i32) {
    %c0_i32 = arith.constant 0 : i32
    %c0_i32_0 = arith.constant 0 : i32
    return %arg0, %arg1, %c0_i32 : i32, i32, i32
  }
}

</mosaic_0001>

<bundles_post_ra>
// kernel: tpu_custom_call.1
= control target key start
LH: loop header
LB: loop body
LE: loop exit
PB: predicated region body
PF: predicated region fallthrough
CT: control target
= control target key end

     0   :  { %10 = vsyncpa [#allocation3], 0  ;;  %s1217_s0 = inlined_call_operand.hbm [shape: f32[2,8,16], index: 0, kind: input, shape index: {}]   ;;  %s1218_s1 = inlined_call_operand.hbm [shape: bf16[8,96], index: 1, kind: input, shape index: {}]   ;;  %s1219_s2 = inlined_call_operand.hbm [shape: bf16[2,16,32], index: 2, kind: output, shape index: {0}]   ;;  %s1220_s3 = inlined_call_operand.hbm [shape: bf16[2,16,32], index: 3, kind: output, shape index: {1}]   ;;  %s1221_s4 = inlined_call_operand.hbm [shape: bf16[2,16,32], index: 4, kind: output, shape index: {2}]  }
   0x1   :  { %12 = vsyncpa [#allocation3 + $0x1], 0 }
   0x2   :  { %13 = vsyncpa [#allocation6], 0 }
   0x3   :  { %14 = vsyncpa [#allocation4], 0 }
   0x4   :  { %16 = vsyncpa [#allocation4 + $0x1], 0 }
   0x5   :  { %17 = vsyncpa [#allocation9], 0 }
   0x6   :  { %19 = vsyncpa [#allocation9 + $0x1], 0  ;;  %s948_s15 = smov 0   ;;  %s950_s16 = smov 0  }
   0x7   :  { %s952_s17 = smov 0   ;;  %s954_s18 = smov 0  }
   0x8   :  { %s956_s19 = smov 0   ;;  %s958_s20 = smov 0  }
   0x9 LB: > { %s979_s21 = sadd.s32 4294967295, %s911_s20   ;;  %s1222_s22 = sadd.s32 4294967294, %s911_s20   ;;  %s911_s20 = sphi %s958_s20, %s25_s20   ;;  %s907_s19 = sphi %s956_s19, %s1240_s19   ;;  %s903_s18 = sphi %s954_s18, %s1239_s18   ;;  %s899_s17 = sphi %s952_s17, %s1238_s17   ;;  %s895_s16 = sphi %s950_s16, %s1237_s16   ;;  %s891_s15 = sphi %s948_s15, %s1236_s15  }
   0xa   : > { %p59_p0 = scmp.ne.s32.totalorder %s895_s16, %s891_s15  ;;  %p1223_p1 = scmp.eq.s32.totalorder %s979_s21, 0 }
   0xb   : > { %p112_p3 = scmp.eq.s32.totalorder %s1222_s22, 1  ;;  %p590_p5 = scmp.ge.s32.totalorder %s911_s20, 1 }
   0xc   : > { %p990_p4 = por %p1223_p1, %p59_p0  ;;  %p175_p7 = scmp.lt.s32.totalorder %s911_s20, 3 }
   0xd   : > { %p995_p6 = por %p112_p3, %p59_p0  ;;  %s913_s26 = smov [#allocation5]  }
   0xe   : > { %p1000_p8 = pnand %p590_p5, %p175_p7  ;;  %s188_s27 = sshll.u32 %s913_s26, 4  ;;  %s189_s27 = int_to_ptr.vmem [resolvable:$true] %s188_s27 }
   0xf   : > { %s1225_s24 = scalar_select %p995_p6, 1, 0 }
  0x10   : > { %p640_p10 = pneg %p1000_p8  ;;  %s37_s29 = sadd.s32 1, %s907_s19 }
  0x11   : > { %s46_s30 = sadd.s32 1, %s899_s17  ;;  %p39_p12 = scmp.ge.s32.totalorder %s37_s29, 2 }
  0x12   : > { %p1009_p11 = pnand %p640_p10, %p1223_p1  ;;  %s728_s5 = scalar_lea.vmem %s189_s27, 64 }
  0x13   : > { %p729_p0 = scmp.ne.s32.totalorder %s189_s27, %s728_s5  ;;  %p736_p7 = scmp.lt.s32.totalorder %s189_s27, %s189_s27 }
  0x14   : > { %p719_p13 = pneg %p1009_p11  ;;  %p737_p2 = scmp.lt.s32.totalorder %s728_s5, %s728_s5 }
  0x16   : > { %p731_p3 = pnand %p729_p0, %p719_p13  ;;  %p738_p9 = por %p737_p2, %p736_p7 }
  0x18   : > { %p732_p5 = pneg %p731_p3 }
  0x1a   : > { %p739_p6 = pnand %p738_p9, %p732_p5 }
  0x1c   : > { %742 = shalt.err (!%p739_p6)
}
  0x1d   : > { %643 = dma.hbm_to_vmem [thread:$0]  (!%p1009_p11), %s1218_s1, 64, %s189_s27, [#allocation6]  }
  0x1e   : > { %s1242_s29 = smov (%p39_p12, %s37_s29), 0  ;;  %p53_p2 = scmp.ne.s32.totalorder %s899_s17, %s895_s16 }
  0x1f   : > { %p54_p6 = scmp.eq.s32.totalorder %s911_s20, 0  ;;  %s41_s8 = ssub.s32 %s907_s19, %s1242_s29 }
  0x20   : > { %p659_p9 = scmp.lt.s32.totalorder %s911_s20, 2  ;;  %p44_p10 = scmp.eq.s32.totalorder %s41_s8, 0 }
  0x21   : > { %p55_p13 = por %p54_p6, %p53_p2  ;;  %p1228_p0 = scmp.eq.s32.totalorder %s979_s21, 1 }
  0x22   : > { %s199_s10 = sand.u32 1, %s899_s17   ;;  %s594_s13 = sshll.u32 %s907_s19, 7 }
  0x23   : > { %p1032_p3 = por %p1228_p0, %p53_p2  ;;  %s593_s12 = sshll.u32 %s199_s10, 3 }
  0x24   : > { %s1038_s11 = scalar_select %p44_p10, %s899_s17, %s46_s30  }
  0x25   : > { %s209_s27 = scalar_lea.hbm %s1217_s0, %s594_s13  ;;  %s203_s28 = scalar_lea.vmem [#allocation2], %s593_s12 }
  0x26   : > { %s211_s5 = sshll.u32 %s203_s28, 4  ;;  %p1044_p11 = pnand %p659_p9, %p55_p13  ;;  %s212_s5 = int_to_ptr.vmem [resolvable:$true] %s211_s5 }
  0x27   : > { %s200_s7 = scalar_lea.sflag [#allocation3], %s199_s10  ;;  %s756_s8 = scalar_lea.vmem %s212_s5, 128 }
  0x28   : > { %p745_p12 = pneg %p1044_p11  ;;  %p757_p5 = scmp.ne.s32.totalorder %s212_s5, %s756_s8 }
  0x29   : > { %s914_s30 = smov [#allocation2]  }
  0x2a   : > { %p759_p7 = pnand %p757_p5, %p745_p12  ;;  %s761_s22 = sshll.u32 %s914_s30, 4  ;;  %s762_s22 = int_to_ptr.vmem [resolvable:$false] %s761_s22 }
  0x2b   : > { %s763_s14 = scalar_lea.vmem %s762_s22, 256  ;;  %p764_p6 = scmp.lt.s32.totalorder %s212_s5, %s762_s22 }
  0x2c   : > { %p760_p2 = pneg %p759_p7  ;;  %p765_p10 = scmp.lt.s32.totalorder %s763_s14, %s756_s8 }
  0x2e   : > { %p766_p0 = por %p765_p10, %p764_p6 }
  0x30   : > { %p767_p1 = pnand %p766_p0, %p760_p2 }
  0x32   : > { %770 = shalt.err (!%p767_p1)
}
  0x33   : > { %647 = dma.hbm_to_vmem [thread:$0]  (!%p1044_p11), %s209_s27, 128, %s212_s5, %s200_s7  }
  0x34   : > { %220 = sbr.rel (%p1000_p8) target bundleno = 512 (0x200), region = 28  ;;  %s1055_s10 = sand.u32 (!%p1000_p8), 1, %s895_s16  }
  0x35   : > { %s1058_s12 = sshll.u32 (!%p1000_p8), %s1055_s10, 3  ;;  %s223_s22 = scalar_lea.sflag (!%p1000_p8), [#allocation3], %s1055_s10 }
  0x36   : > { %s226_s13 = scalar_lea.vmem (!%p1000_p8), [#allocation2], %s1058_s12 }
  0x39   : > { %874 = dma.done.wait (%p990_p4), %s223_s22, 128  }
  0x3a   : > { %876 = vsyncadd (%p990_p4), %s223_s22, 4294967168  ;;  %p1231_p1 = scmp.eq.s32.totalorder %s979_s21, 0 }
  0x3c   : > { %878 = dma.done.wait (%p1231_p1), [#allocation6], 64   ;;  %p1232_p8 = pmov %p1231_p1 }
  0x3d   : > { %v915_v0 = vmov 0.0   ;;  %vm916_vm0 = vmmov 0   ;;  %vm292_vm1 = vcmask 1043456   ;;  %v269_v1 = vld [vmem:[%s226_s13] sm:$0xff]  ;;  %v271_v2 = vld [vmem:[#allocation5] sm:$0xf] }
  0x3e   : > { %880 = vsyncadd (%p1232_p8), [#allocation6], 4294967232  ;;  %622 = vmatprep.subr.bf16.mxu0 %v915_v0  ;;  %624 = vmatprep.mubr.msk.bf16.mxu0 %vm916_vm0, %v915_v0  ;;  %v270_v3 = vpack.c.bf16 %v269_v1, %v269_v1  ;;  %v294_v4 = vsel %vm292_vm1, %v271_v2, 0  ;;  %vm288_vm2 = vcmask 64512   ;;  %vm345_vm3 = vcmask 257024   ;;  %s250_s23 = scalar_lea.vmem [#allocation7], %s1058_s12 }
  0x3f   : > { %623 = vmatpush3.bf16.msra.mxu0 %v294_v4  ;;  %s390_s25 = sshll.u32 %s250_s23, 4  ;;  %s1072_s26 = sshll.u32 %s903_s18, 7  ;;  %s1076_s25 = int_to_ptr.vmem [resolvable:$true] %s390_s25 }
  0x40   : > { %272 = vxpose.xlu0.c.b16.start.end [1/1] (short) (narrow) %v270_v3, 16  ;;  %s917_s27 = smov 64   ;;  %s918_s28 = smov 96  }
  0x41   : > { %s1082_s18 = scalar_lea.hbm %s1219_s2, %s1072_s26  ;;  %s365_s7 = scalar_lea.sflag [#allocation4], %s1055_s10 }
  0x42   : > { %s771_s8 = scalar_lea.vmem %s1076_s25, 128  ;;  %s919_s30 = smov [#allocation7]  }
  0x43   : > { %p772_p4 = scmp.ne.s32.totalorder %s1076_s25, %s771_s8  ;;  %s775_s14 = sshll.u32 %s919_s30, 4  ;;  %s776_s14 = int_to_ptr.vmem [resolvable:$false] %s775_s14 }
  0x44   : > { %s777_s22 = scalar_lea.vmem %s776_s14, 256  ;;  %p778_p11 = scmp.lt.s32.totalorder %s1076_s25, %s776_s14 }
  0x45   : > { %p773_p9 = pnand %p772_p4, %p1032_p3  ;;  %p779_p12 = scmp.lt.s32.totalorder %s777_s22, %s771_s8 }
  0x47   : > { %p774_p13 = pneg %p773_p9  ;;  %p780_p5 = por %p779_p12, %p778_p11 }
  0x49   : > { %p781_p7 = pnand %p780_p5, %p774_p13 }
  0xa2   : > { %v280_v5 = vpop.trf.xlu0 }
  0xa3   : > { %625 = vmatmul.mubr.msk.bf16.vlgmr.msra.gmra.mxu0 %vm288_vm2, %v280_v5 }
 0x163   : > { %v330_v6 = vpop.f32.mrf.mxu0 }
 0x164   : > { %v615_v7 = vpack.c.bf16 %v330_v6, %v330_v6 }
 0x165   : > { %v626_v8 = vpop.f32.mrf.mxu0 }
 0x166   : > { %346 = vst.msk [vmem:[%s250_s23] sm:$0xf] %vm345_vm3, %v615_v7  ;;  %356 = vrot.lane.b32.xlu1 %v615_v7, %s917_s27  ;;  %348 = vrot.lane.b32.xlu0 %v615_v7, %s918_s28 }
 0x167   : > { %v333_v9 = vpop.f32.mrf.mxu0 }
 0x168   : > { %v616_v10 = vpack.c.bf16 %v333_v9, %v333_v9 }
 0x169   : > { %v627_v11 = vpop.f32.mrf.mxu0 }
 0x16a   : > { %347 = vst.msk [vmem:[%s250_s23 + $0x4] sm:$0xf] %vm345_vm3, %v616_v10  ;;  %350 = vrot.lane.b32.xlu1 %v616_v10, %s918_s28 }
 0x16b   : > { %784 = shalt.err (!%p781_p7)
}
 0x16c   : > { %s785_s13 = scalar_lea.hbm %s1082_s18, 128  ;;  %s789_s5 = scalar_lea.hbm %s1219_s2, 256 }
 0x16d   : > { %p786_p2 = scmp.ne.s32.totalorder %s1082_s18, %s785_s13  ;;  %p790_p0 = scmp.lt.s32.totalorder %s1082_s18, %s1219_s2 }
 0x16e   : > { %p791_p1 = scmp.lt.s32.totalorder %s789_s5, %s785_s13 }
 0x16f   : > { %p787_p6 = pnand %p786_p2, %p1032_p3 }
 0x170   : > { %p792_p8 = por %p791_p1, %p790_p0 }
 0x171   : > { %p788_p10 = pneg %p787_p6 }
 0x173   : > { %p793_p4 = pnand %p792_p8, %p788_p10 }
 0x175   : > { %796 = shalt.err (!%p793_p4)
}
 0x176   : > { %s920_s8 = smov 4   ;;  %358 = vrot.lane.b32.xlu1 %v616_v10, %s917_s27  ;;  %s257_s14 = scalar_lea.vmem [#allocation8], %s1058_s12 }
 0x177   : > { %634 = dma.vmem_to_hbm [thread:$0]  (%p1032_p3), %s1076_s25, 128, %s1082_s18, %s365_s7, %s917_s27, %s917_s27, %s920_s8  }
 0x178   : > { %s408_s22 = sshll.u32 %s257_s14, 4  ;;  %s369_s13 = sand.u32 1, %s979_s21   ;;  %s1120_s22 = int_to_ptr.vmem [resolvable:$true] %s408_s22 }
 0x179   : > { %s1115_s23 = scalar_lea.vmem [#allocation10], %s1058_s12  ;;  %s1126_s18 = scalar_lea.hbm %s1220_s3, %s1072_s26 }
 0x17a   : > { %s426_s7 = sshll.u32 %s1115_s23, 4  ;;  %s1130_s21 = scalar_lea.sflag [#allocation9], %s369_s13  ;;  %s1158_s7 = int_to_ptr.vmem [resolvable:$true] %s426_s7 }
 0x17b   : > { %s797_s12 = scalar_lea.vmem %s1120_s22, 128  ;;  %s921_s28 = smov [#allocation8]  }
 0x17c   : > { %p798_p9 = scmp.ne.s32.totalorder %s1120_s22, %s797_s12  ;;  %s801_s5 = sshll.u32 %s921_s28, 4  ;;  %s802_s5 = int_to_ptr.vmem [resolvable:$false] %s801_s5 }
 0x17d   : > { %s803_s6 = scalar_lea.vmem %s802_s5, 256  ;;  %p804_p12 = scmp.lt.s32.totalorder %s1120_s22, %s802_s5 }
 0x17e   : > { %p799_p13 = pnand %p798_p9, %p1032_p3  ;;  %p805_p5 = scmp.lt.s32.totalorder %s803_s6, %s797_s12 }
 0x180   : > { %p800_p11 = pneg %p799_p13  ;;  %p806_p7 = por %p805_p5, %p804_p12 }
 0x182   : > { %p807_p2 = pnand %p806_p7, %p800_p11 }
 0x1d8   : > { %v357_v12 = vpop.permute.xlu1 %356  ;;  %v349_v13 = vpop.permute.xlu0 %348 }
 0x1d9   : > { %362 = vst.msk [vmem:[%s1115_s23] sm:$0xf] %vm345_vm3, %v357_v12  ;;  %354 = vst.msk [vmem:[%s257_s14] sm:$0xf] %vm345_vm3, %v349_v13 }
 0x1dc   : > { %v351_v14 = vpop.permute.xlu1 %350 }
 0x1dd   : > { %355 = vst.msk [vmem:[%s257_s14 + $0x4] sm:$0xf] %vm345_vm3, %v351_v14 }
 0x1de   : > { %810 = shalt.err (!%p807_p2)
}
 0x1df   : > { %s811_s30 = scalar_lea.hbm %s1126_s18, 128  ;;  %s815_s10 = scalar_lea.hbm %s1220_s3, 256 }
 0x1e0   : > { %p812_p6 = scmp.ne.s32.totalorder %s1126_s18, %s811_s30  ;;  %p816_p1 = scmp.lt.s32.totalorder %s1126_s18, %s1220_s3 }
 0x1e1   : > { %p817_p8 = scmp.lt.s32.totalorder %s815_s10, %s811_s30 }
 0x1e2   : > { %p813_p10 = pnand %p812_p6, %p1032_p3 }
 0x1e3   : > { %p818_p4 = por %p817_p8, %p816_p1 }
 0x1e4   : > { %p814_p0 = pneg %p813_p10 }
 0x1e6   : > { %p819_p9 = pnand %p818_p4, %p814_p0 }
 0x1e8   : > { %822 = shalt.err (!%p819_p9)
}
 0x1e9   : > { %635 = dma.vmem_to_hbm [thread:$0]  (%p1032_p3), %s1120_s22, 128, %s1126_s18, %s1130_s21, %s917_s27, %s917_s27, %s920_s8   ;;  %v359_v15 = vpop.permute.xlu1 %358 }
 0x1ea   : > { %s1164_s6 = scalar_lea.hbm %s1221_s4, %s1072_s26  ;;  %363 = vst.msk [vmem:[%s1115_s23 + $0x4] sm:$0xf] %vm345_vm3, %v359_v15  ;;  %s823_s30 = scalar_lea.vmem %s1158_s7, 128 }
 0x1eb   : > { %p824_p13 = scmp.ne.s32.totalorder %s1158_s7, %s823_s30  ;;  %s922_s22 = smov [#allocation10]  }
 0x1ec   : > { %s827_s18 = sshll.u32 %s922_s22, 4  ;;  %s828_s18 = int_to_ptr.vmem [resolvable:$false] %s827_s18 }
 0x1ed   : > { %p825_p11 = pnand %p824_p13, %p1032_p3  ;;  %s829_s14 = scalar_lea.vmem %s828_s18, 256 }
 0x1ee   : > { %p830_p5 = scmp.lt.s32.totalorder %s1158_s7, %s828_s18  ;;  %p831_p7 = scmp.lt.s32.totalorder %s829_s14, %s823_s30 }
 0x1ef   : > { %p826_p12 = pneg %p825_p11 }
 0x1f0   : > { %p832_p2 = por %p831_p7, %p830_p5 }
 0x1f2   : > { %p833_p6 = pnand %p832_p2, %p826_p12 }
 0x1f4   : > { %836 = shalt.err (!%p833_p6)
}
 0x1f5   : > { %s837_s26 = scalar_lea.hbm %s1164_s6, 128  ;;  %s841_s10 = scalar_lea.hbm %s1221_s4, 256 }
 0x1f6   : > { %p838_p10 = scmp.ne.s32.totalorder %s1164_s6, %s837_s26  ;;  %p842_p8 = scmp.lt.s32.totalorder %s1164_s6, %s1221_s4 }
 0x1f7   : > { %p843_p4 = scmp.lt.s32.totalorder %s841_s10, %s837_s26 }
 0x1f8   : > { %p839_p0 = pnand %p838_p10, %p1032_p3 }
 0x1f9   : > { %p844_p9 = por %p843_p4, %p842_p8 }
 0x1fa   : > { %p840_p1 = pneg %p839_p0 }
 0x1fc   : > { %p845_p13 = pnand %p844_p9, %p840_p1 }
 0x1fe   : > { %848 = shalt.err (!%p845_p13)
}
 0x1ff   : > { %636 = dma.vmem_to_hbm [thread:$0]  (%p1032_p3), %s1158_s7, 128, %s1164_s6, %s1130_s21, %s917_s27, %s917_s27, %s920_s8  }
 0x200 PF: > { %s441_s12 = sand.u32 1, %s891_s15   ;;  %p1233_p11 = scmp.ne.s32.totalorder %s1225_s24, 0 }
 0x201   : > { %p1234_p12 = scmp.ge.s32.totalorder %s911_s20, 2  ;;  %s442_s5 = scalar_lea.sflag [#allocation4], %s441_s12 }
 0x203   : > { %p649_p5 = pnand %p1234_p12, %p1233_p11 }
 0x205   : > { %p650_p7 = pneg %p649_p5 }
 0x207   : > { %882 = dma.done.wait (%p650_p7), %s442_s5, 128  }
 0x208   : > { %884 = vsyncadd (%p650_p7), %s442_s5, 4294967168  ;;  %s1235_s9 = sadd.s32 4294967294, %s911_s20  }
 0x209   : > { %s450_s30 = sand.u32 1, %s1235_s9  }
 0x20a   : > { %s451_s22 = scalar_lea.sflag [#allocation9], %s450_s30 }
 0x20b   : > { %886 = dma.done.wait (%p650_p7), %s451_s22, 256  }
 0x20c   : > { %888 = vsyncadd (%p650_p7), %s451_s22, 4294967040  ;;  %s25_s20 = sadd.s32 1, %s911_s20   ;;  %s1236_s15 = smov %s895_s16 }
 0x20d   : > { %p22_p3 = scmp.ge.s32.totalorder %s25_s20, 4   ;;  %s1237_s16 = smov %s899_s17 }
 0x20e   : > { %s1238_s17 = smov %s1038_s11  ;;  %s1239_s18 = smov %s907_s19 }
 0x20f   : > { %s1240_s19 = smov %s1242_s29  ;;  %24 = sbr.rel (!%p22_p3) target bundleno = 9 (0x9), region = 109 }
 0x214   :  { %465 = vsyncpa [#allocation3], 1 }
 0x215   :  { %467 = vsyncpa [#allocation3 + $0x1], 1 }
 0x216   :  { %468 = vsyncpa [#allocation6], 1 }
 0x217   :  { %469 = vsyncpa [#allocation4], 1 }
 0x218   :  { %471 = vsyncpa [#allocation4 + $0x1], 1 }
 0x219   :  { %472 = vsyncpa [#allocation9], 1 }
 0x21a   :  { %474 = vsyncpa [#allocation9 + $0x1], 1 }

</bundles_post_ra>
